<compile_context>
chip_gen: v7x
topology: tpu7x:2x2x1
jax: 0.10.0
libtpu: 0.0.40
codegen_flags: <defaults>
</compile_context>

<pallas_src>
import math
from functools import partial

import jax
import jax.numpy as jnp
from jax.experimental import pallas as pl
from jax.experimental.pallas import tpu as pltpu


def _round_up(v, m):
    return -(-v // m) * m


def _cdiv(a, b):
    return -(-a // b)


def _conv1d_same_kernel(x_ref, w_ref, b_ref, o_ref, *, taps, t_out, tb):
    """One grid step = TB batch elements x one lane-dense output L-tile.

    x_ref: (TB, S, C_in_pad, WT)    overlapped (halo-inclusive) phase window
    w_ref: (C_out_pad, K*C_in_pad)  taps folded into the contraction dim
    b_ref: (C_out_pad, 1)           float32 bias
    o_ref: (TB, C_out_pad, T_OUT)
    """
    w = w_ref[...]
    b = b_ref[...]
    # im2col: K static lane-offset slices (hoisted out of the batch loop) and ONE
    # sublane-aligned concat along the contraction dim -> (TB, K*C_in_pad, T_OUT).
    slabs = [x_ref[:, r, :, q:q + t_out] for (q, r) in taps]
    xcol = slabs[0] if len(slabs) == 1 else jnp.concatenate(slabs, axis=1)
    for t in range(tb):  # static, small trip count
        acc = jnp.dot(w, xcol[t], preferred_element_type=jnp.float32)
        o_ref[t] = (acc + b).astype(o_ref.dtype)


def conv1d_same_padding(x, weight, bias, *, stride=1, dilation=1,
                        l_tile_max=None, compute_dtype=None):
    """Forward of Conv1dSamePadding.

    x: (N, C_in, L), weight: (C_out, C_in, K), bias: (C_out,).
    Returns (N, C_out, ceil(L / stride)) in x's original dtype.
    """
    n, c_in, l = x.shape
    c_out, c_in_w, k = weight.shape
    assert c_in == c_in_w, (c_in, c_in_w)
    s, d = int(stride), int(dilation)
    out_dtype = x.dtype

    # Cast at the very top so every subsequent wrapper pass (pad/reshape/gather) and the
    # kernel's input DMA move half the HBM bytes when compute_dtype=bf16.
    if compute_dtype is not None:
        x = x.astype(compute_dtype)
        weight = weight.astype(compute_dtype)
    cdt = x.dtype
    c_size = jnp.dtype(cdt).itemsize
    o_size = jnp.dtype(out_dtype).itemsize
    sub = 16 if c_size == 2 else 8            # sublane granularity (bf16 packs pairs)

    # TF-style SAME padding, identical to Conv1dSamePadding.calc_same_pad.
    pad = max((math.ceil(l / s) - 1) * s + (k - 1) * d + 1 - l, 0)
    pad_l = pad // 2
    l_out = (l + pad - d * (k - 1) - 1) // s + 1          # == ceil(L / stride)

    # Sublane-aligned channel counts (zero-padded; extra rows are zero / sliced off).
    c_in_pad = _round_up(c_in, sub)
    c_out_pad = _round_up(c_out, sub)

    # Tap decomposition: padded-input index t*s + kk*d == (t + q_kk)*s + r_kk.
    taps = tuple(((kk * d) // s, (kk * d) % s) for kk in range(k))
    q_max = ((k - 1) * d) // s

    # Generation-aware VMEM budget (v7x: 64 MiB/TC, v5e/v6e: 128 MiB).
    try:
        vmem_cap = int(pltpu.get_tpu_info().vmem_capacity_bytes)
    except Exception:
        vmem_cap = 128 * 2**20
    vmem_budget = max(int(min(vmem_cap - 24 * 2**20, 100 * 2**20)), 16 * 2**20)

    if l_tile_max is None:
        l_tile_max = 2048 if vmem_cap > 96 * 2**20 else 1024
    l_tile_max = max(128, _round_up(int(l_tile_max), 128))

    def step_bytes(tb_, t_out_):
        wt_ = t_out_ + q_max
        in_b = tb_ * s * c_in_pad * wt_ * c_size
        out_b = tb_ * c_out_pad * t_out_ * o_size
        w_b = c_out_pad * k * c_in_pad * c_size + c_out_pad * 4
        col_b = tb_ * k * c_in_pad * t_out_ * c_size       # im2col intermediate
        acc_b = 2 * c_out_pad * t_out_ * 4                  # f32 accumulator
        return 2 * (in_b + out_b + w_b) + col_b + acc_b     # x2: double-buffered blocks

    # Lane-dense output tile (always a multiple of 128 -> unmasked vst); padded tail
    # columns are computed on zero input and sliced off in the wrapper.
    t_out = min(l_tile_max, _round_up(l_out, 128))
    while t_out > 128 and step_bytes(1, t_out) > vmem_budget:
        t_out = max(128, _round_up(t_out // 2, 128))
    nt = _cdiv(l_out, t_out)
    l_out_pad = nt * t_out
    wt = t_out + q_max

    # Batch elements per grid step (amortize ~600-cycle step cost); N is zero-padded to a
    # multiple of tb instead of falling back to tb=1 for odd batch sizes.
    tb = 1
    for cand in (8, 4, 2):
        if cand <= n and step_bytes(cand, t_out) <= vmem_budget:
            tb = cand
            break
    n_pad = _round_up(n, tb)
    nbb = n_pad // tb
    # v7x megacore: keep at least two parallel grid steps when there is enough work.
    while nbb * nt < 2 and tb > 1:
        tb //= 2
        n_pad = _round_up(n, tb)
        nbb = n_pad // tb

    est = step_bytes(tb, t_out)
    vmem_limit = int(min(vmem_budget, max(32 * 2**20, int(1.5 * est))))

    # Per-phase padded length: covers every (padded) output column's taps plus the
    # SAME-padded input; everything past the real data is zeros.
    lp = max(l_out_pad + q_max, _cdiv(l + pad, s))
    right = lp * s - l - pad_l
    assert right >= 0

    # One fused pad: batch rows -> n_pad, channels -> c_in_pad, length -> SAME + tail.
    x_pad = jnp.pad(x, ((0, n_pad - n), (0, c_in_pad - c_in), (pad_l, right)))
    if s == 1:
        x_ph = x_pad[:, None]                               # (n_pad, 1, c_in_pad, lp)
    else:
        # Phase split: x_ph[b, r, c, m] == x_pad[b, c, m*s + r]; all in-kernel slices
        # stay contiguous along the lane dim.
        x_ph = jnp.transpose(x_pad.reshape(n_pad, c_in_pad, lp, s), (0, 3, 1, 2))

    # Overlapped L-tiles (tile j = phase columns [j*t_out, j*t_out + wt)), tile-major so
    # every BlockSpec stays plain Blocked and the kernel sees one contiguous window.
    if nt == 1:
        x_tiles = x_ph[:, :, :, :wt]                        # (n_pad, s, c_in_pad, wt)
    else:
        pos = jnp.arange(nt)[:, None] * t_out + jnp.arange(wt)[None, :]
        x_tiles = jnp.moveaxis(jnp.take(x_ph, pos, axis=-1), 3, 0)
        x_tiles = x_tiles.reshape(nt * n_pad, s, c_in_pad, wt)

    # Weight: taps folded into the contraction dim, channels zero-padded to sublane
    # granularity -> (c_out_pad, K*c_in_pad). Bias kept in f32.
    w3 = jnp.transpose(weight, (0, 2, 1))                   # (c_out, k, c_in)
    w3 = jnp.pad(w3, ((0, c_out_pad - c_out), (0, 0), (0, c_in_pad - c_in)))
    w2 = w3.reshape(c_out_pad, k * c_in_pad)
    b2 = jnp.pad(bias.astype(jnp.float32), (0, c_out_pad - c_out)).reshape(c_out_pad, 1)

    kernel = partial(_conv1d_same_kernel, taps=taps, t_out=t_out, tb=tb)

    out = pl.pallas_call(
        kernel,
        out_shape=jax.ShapeDtypeStruct((n_pad, c_out_pad, l_out_pad), out_dtype),
        grid=(nbb, nt),
        in_specs=[
            pl.BlockSpec((tb, s, c_in_pad, wt), lambda bb, j: (j * nbb + bb, 0, 0, 0)),
            pl.BlockSpec((c_out_pad, k * c_in_pad), lambda bb, j: (0, 0)),
            pl.BlockSpec((c_out_pad, 1), lambda bb, j: (0, 0)),
        ],
        out_specs=pl.BlockSpec((tb, c_out_pad, t_out), lambda bb, j: (bb, 0, j)),
        compiler_params=pltpu.CompilerParams(
            dimension_semantics=("parallel", "parallel"),
            vmem_limit_bytes=vmem_limit),
    )(x_tiles, w2, b2)

    return out[:n, :c_out, :l_out]


def _reference(x, weight, bias, stride, dilation):
    """Pure-XLA reference identical to the PyTorch module's forward."""
    k = weight.shape[-1]
    l = x.shape[-1]
    pad = max((math.ceil(l / stride) - 1) * stride + (k - 1) * dilation + 1 - l, 0)
    x_pad = jnp.pad(x, ((0, 0), (0, 0), (pad // 2, pad - pad // 2)))
    out = jax.lax.conv_general_dilated(
        x_pad, weight, window_strides=(stride,), padding="VALID",
        rhs_dilation=(dilation,), dimension_numbers=("NCH", "OIH", "NCH"))
    return out + bias[None, :, None]


if __name__ == "__main__":
    key = jax.random.PRNGKey(0)

    # (N, C_in, C_out, L, K, stride, dilation, l_tile_max)
    cases = [
        (2, 4, 8, 16, 3, 1, 1, None),    # base
        (2, 4, 8, 16, 3, 2, 1, None),    # stride > 1 (phase decomposition)
        (2, 4, 8, 37, 5, 2, 3, None),    # stride + dilation, odd length, asymmetric pad
        (2, 4, 8, 16, 5, 1, 2, None),    # dilation only
        (2, 4, 8, 384, 3, 1, 1, 128),    # multi-tile L_out, evenly divisible
        (3, 4, 8, 300, 3, 1, 1, 128),    # multi-tile, ragged last tile, odd batch
        (2, 6, 5, 40, 3, 1, 1, None),    # misaligned C_in / C_out (channel padding)
    ]
    for idx, (N, C_in, C_out, L, K, s, d, ltm) in enumerate(cases):
        key, kx, kw, kb = jax.random.split(key, 4)
        x = jax.random.normal(kx, (N, C_in, L), jnp.float32)
        bound = 1.0 / math.sqrt(C_in * K)   # nn.Conv1d default init range
        weight = jax.random.uniform(kw, (C_out, C_in, K), jnp.float32, -bound, bound)
        bias = jax.random.uniform(kb, (C_out,), jnp.float32, -bound, bound)

        out = conv1d_same_padding(x, weight, bias, stride=s, dilation=d, l_tile_max=ltm)
        out = jax.block_until_ready(out)

        ref = _reference(x, weight, bias, s, d)
        assert out.shape == ref.shape, (idx, out.shape, ref.shape)
        err = float(jnp.max(jnp.abs(out - ref)))
        assert jnp.allclose(out, ref, atol=1e-4, rtol=1e-4), (idx, err)

    # bf16 compute-dtype smoke test (accumulation stays f32); looser tolerance.
    key, kx, kw, kb = jax.random.split(key, 4)
    x = jax.random.normal(kx, (2, 4, 16), jnp.float32)
    bound = 1.0 / math.sqrt(4 * 3)
    weight = jax.random.uniform(kw, (8, 4, 3), jnp.float32, -bound, bound)
    bias = jax.random.uniform(kb, (8,), jnp.float32, -bound, bound)
    out_bf = conv1d_same_padding(x, weight, bias, stride=1, dilation=1,
                                 compute_dtype=jnp.bfloat16)
    out_bf = jax.block_until_ready(out_bf)
    ref = _reference(x, weight, bias, 1, 1)
    assert out_bf.shape == ref.shape
    assert jnp.allclose(out_bf, ref, atol=5e-2, rtol=5e-2), \
        float(jnp.max(jnp.abs(out_bf - ref)))

    print("KERNEL_OK")
</pallas_src>

<mosaic_0001>
module attributes {stable_mosaic.version = 11 : i64} {
  func.func @_conv1d_same_kernel(%arg0: i32, %arg1: i32, %arg2: memref<1x1x8x130xf32, #tpu.memory_space<vmem>>, %arg3: memref<8x24xf32, #tpu.memory_space<vmem>>, %arg4: memref<8x1xf32, #tpu.memory_space<vmem>>, %arg5: memref<1x8x128xf32, #tpu.memory_space<vmem>>) attributes {dimension_semantics = [#tpu.dimension_semantics<parallel>, #tpu.dimension_semantics<parallel>], iteration_bounds = array<i64: 2, 1>, scalar_prefetch = 0 : i64, scratch_operands = 0 : i64, tpu.core_type = #tpu.core_type<tc>, window_params = [{transform_indices = @transform_0, window_bounds = array<i64: 1, 1, 8, 130>}, {pipeline_mode = #tpu.pipeline_mode<synchronous>, transform_indices = @transform_1, window_bounds = array<i64: 8, 24>}, {pipeline_mode = #tpu.pipeline_mode<synchronous>, transform_indices = @transform_2, window_bounds = array<i64: 8, 1>}, {transform_indices = @transform_3, window_bounds = array<i64: 1, 8, 128>}]} {
    %c0 = arith.constant 0 : index
    %c0_0 = arith.constant 0 : index
    %0 = vector.load %arg3[%c0, %c0_0] : memref<8x24xf32, #tpu.memory_space<vmem>>, vector<8x24xf32>
    %c0_1 = arith.constant 0 : index
    %c0_2 = arith.constant 0 : index
    %1 = vector.load %arg4[%c0_1, %c0_2] : memref<8x1xf32, #tpu.memory_space<vmem>>, vector<8x1xf32>
    %c0_3 = arith.constant 0 : index
    %c0_4 = arith.constant 0 : index
    %c0_5 = arith.constant 0 : index
    %c0_6 = arith.constant 0 : index
    %2 = vector.load %arg2[%c0_3, %c0_4, %c0_5, %c0_6] : memref<1x1x8x130xf32, #tpu.memory_space<vmem>>, vector<1x1x8x128xf32>
    %3 = vector.shape_cast %2 : vector<1x1x8x128xf32> to vector<1x8x128xf32>
    %c0_7 = arith.constant 0 : index
    %c0_8 = arith.constant 0 : index
    %c0_9 = arith.constant 0 : index
    %c1 = arith.constant 1 : index
    %4 = vector.load %arg2[%c0_7, %c0_8, %c0_9, %c1] : memref<1x1x8x130xf32, #tpu.memory_space<vmem>>, vector<1x1x8x128xf32>
    %5 = vector.shape_cast %4 : vector<1x1x8x128xf32> to vector<1x8x128xf32>
    %c0_10 = arith.constant 0 : index
    %c0_11 = arith.constant 0 : index
    %c0_12 = arith.constant 0 : index
    %c2 = arith.constant 2 : index
    %6 = vector.load %arg2[%c0_10, %c0_11, %c0_12, %c2] : memref<1x1x8x130xf32, #tpu.memory_space<vmem>>, vector<1x1x8x128xf32>
    %7 = vector.shape_cast %6 : vector<1x1x8x128xf32> to vector<1x8x128xf32>
    %8 = tpu.concatenate %3, %5, %7 in 1 : vector<1x8x128xf32>, vector<1x8x128xf32>, vector<1x8x128xf32> -> vector<1x24x128xf32>
    %9 = vector.shape_cast %8 : vector<1x24x128xf32> to vector<24x128xf32>
    %cst = arith.constant dense<0.000000e+00> : vector<8x128xf32>
    %10 = tpu.matmul %0, %9, %cst {dimension_numbers = #tpu.dot_dimension_numbers<[1], [0], [0], [1], [0, 0, 1, 1], [], []>} : vector<8x24xf32>, vector<24x128xf32>, vector<8x128xf32> -> vector<8x128xf32>
    %11 = vector.broadcast %1 : vector<8x1xf32> to vector<8x128xf32>
    %12 = arith.addf %10, %11 : vector<8x128xf32>
    %c0_13 = arith.constant 0 : index
    %c0_14 = arith.constant 0 : index
    %c0_15 = arith.constant 0 : index
    %13 = vector.load %arg5[%c0_13, %c0_14, %c0_15] : memref<1x8x128xf32, #tpu.memory_space<vmem>>, vector<1x8x128xf32>
    %14 = vector.shape_cast %13 : vector<1x8x128xf32> to vector<8x128xf32>
    %15 = vector.shape_cast %12 : vector<8x128xf32> to vector<1x8x128xf32>
    tpu.vector_store %arg5[%c0_13, %c0_14, %c0_15], %15 {strides = array<i32>} : memref<1x8x128xf32, #tpu.memory_space<vmem>>, vector<1x8x128xf32>,
    return
  }
  func.func @transform_0(%arg0: i32, %arg1: i32) -> (i32, i32, i32, i32) {
    %c2_i32 = arith.constant 2 : i32
    %0 = arith.muli %arg1, %c2_i32 : i32
    %1 = arith.addi %0, %arg0 : i32
    %c0_i32 = arith.constant 0 : i32
    %c0_i32_0 = arith.constant 0 : i32
    %c0_i32_1 = arith.constant 0 : i32
    %c0_i32_2 = arith.constant 0 : i32
    return %1, %c0_i32, %c0_i32_0, %c0_i32_1 : i32, i32, i32, i32
  }
  func.func @transform_1(%arg0: i32, %arg1: i32) -> (i32, i32) {
    %c0_i32 = arith.constant 0 : i32
    %c0_i32_0 = arith.constant 0 : i32
    %c0_i32_1 = arith.constant 0 : i32
    return %c0_i32, %c0_i32_0 : i32, i32
  }
  func.func @transform_2(%arg0: i32, %arg1: i32) -> (i32, i32) {
    %c0_i32 = arith.constant 0 : i32
    %c0_i32_0 = arith.constant 0 : i32
    %c0_i32_1 = arith.constant 0 : i32
    return %c0_i32, %c0_i32_0 : i32, i32
  }
  func.func @transform_3(%arg0: i32, %arg1: i32) -> (i32, i32, i32) {
    %c0_i32 = arith.constant 0 : i32
    %c0_i32_0 = arith.constant 0 : i32
    return %arg0, %c0_i32, %arg1 : i32, i32, i32
  }
}

</mosaic_0001>

<bundles_post_ra>
// kernel: tpu_custom_call.1
= control target key start
LH: loop header
LB: loop body
LE: loop exit
PB: predicated region body
PF: predicated region fallthrough
CT: control target
= control target key end

     0   :  { %8 = vsyncpa [#allocation3], 0  ;;  %s833_s0 = inlined_call_operand.hbm [shape: f32[2,1,8,130], index: 0, kind: input, shape index: {}]   ;;  %s834_s1 = inlined_call_operand.vmem [shape: f32[8,24], index: 1, kind: input, shape index: {}]   ;;  %s835_s2 = inlined_call_operand.vmem [shape: f32[8,1], index: 2, kind: input, shape index: {}]   ;;  %s836_s3 = inlined_call_operand.hbm [shape: f32[2,8,128], index: 3, kind: output, shape index: {}]  }
   0x1   :  { %10 = vsyncpa [#allocation3 + $0x1], 0 }
   0x2   :  { %11 = vsyncpa [#allocation4], 0 }
   0x3   :  { %13 = vsyncpa [#allocation4 + $0x1], 0  ;;  %s654_s12 = smov 0   ;;  %s656_s13 = smov 0  }
   0x4   :  { %s658_s14 = smov 0   ;;  %s660_s15 = smov 0  }
   0x5   :  { %s662_s16 = smov 0   ;;  %s664_s17 = smov 0  }
   0x6 LB: > { %s405_s18 = sadd.s32 4294967295, %s624_s17   ;;  %s406_s19 = sadd.s32 4294967294, %s624_s17   ;;  %s624_s17 = sphi %s664_s17, %s19_s17   ;;  %s620_s16 = sphi %s662_s16, %s852_s16   ;;  %s616_s15 = sphi %s660_s15, %s851_s15   ;;  %s612_s14 = sphi %s658_s14, %s850_s14   ;;  %s608_s13 = sphi %s656_s13, %s849_s13   ;;  %s604_s12 = sphi %s654_s12, %s848_s12  }
   0x7   : > { %s31_s20 = sadd.s32 1, %s620_s16  ;;  %s42_s21 = sadd.s32 1, %s612_s14 }
   0x8   : > { %p33_p0 = scmp.ge.s32.totalorder %s31_s20, 2  ;;  %p49_p1 = scmp.ne.s32.totalorder %s612_s14, %s608_s13 }
   0x9   : > { %p50_p2 = scmp.eq.s32.totalorder %s624_s17, 0  ;;  %p55_p3 = scmp.ne.s32.totalorder %s608_s13, %s604_s12 }
   0xa   : > { %s854_s20 = smov (%p33_p0, %s31_s20), 0  ;;  %p56_p5 = scmp.eq.s32.totalorder %s405_s18, 0 }
   0xb   : > { %p695_p4 = por %p50_p2, %p49_p1  ;;  %s39_s23 = ssub.s32 %s620_s16, %s854_s20 }
   0xc   : > { %p123_p6 = scmp.eq.s32.totalorder %s405_s18, 1  ;;  %p40_p7 = scmp.eq.s32.totalorder %s39_s23, 0 }
   0xd   : > { %p701_p8 = por %p56_p5, %p55_p3  ;;  %p129_p10 = scmp.eq.s32.totalorder %s406_s19, 1 }
   0xe   : > { %p705_p9 = por %p123_p6, %p49_p1  ;;  %p449_p13 = scmp.lt.s32.totalorder %s624_s17, 2 }
   0xf   : > { %s710_s26 = scalar_select %p40_p7, %s612_s14, %s42_s21  }
  0x10   : > { %s840_s25 = scalar_select %p705_p9, 1, 0 }
  0x11   : > { %p712_p11 = por %p129_p10, %p55_p3  ;;  %s155_s28 = sand.u32 1, %s612_s14  }
  0x12   : > { %s409_s29 = sshll.u32 %s155_s28, 4  ;;  %s420_s30 = sshll.u32 %s620_s16, 8 }
  0x13   : > { %s841_s27 = scalar_select %p712_p11, 1, 0 }
  0x14   : > { %s723_s6 = scalar_lea.hbm %s833_s0, %s420_s30  ;;  %s159_s7 = scalar_lea.vmem [#allocation2], %s409_s29 }
  0x15   : > { %s169_s8 = sshll.u32 %s159_s7, 4  ;;  %p729_p0 = pnand %p449_p13, %p695_p4  ;;  %s725_s8 = int_to_ptr.vmem [resolvable:$true] %s169_s8 }
  0x16   : > { %s156_s10 = scalar_lea.sflag [#allocation3], %s155_s28  ;;  %s512_s11 = scalar_lea.hbm %s723_s6, 256 }
  0x17   : > { %p513_p3 = scmp.ne.s32.totalorder %s723_s6, %s512_s11  ;;  %p514_p5 = pneg %p729_p0 }
  0x18   : > { %s517_s21 = scalar_lea.hbm %s833_s0, 512  ;;  %p518_p4 = scmp.lt.u32.totalorder %s723_s6, %s833_s0 }
  0x19   : > { %p515_p6 = pnand %p514_p5, %p513_p3  ;;  %p519_p10 = scmp.lt.u32.totalorder %s517_s21, %s512_s11 }
  0x1a   : > { %p521_p12 = scmp.lt.u32.totalorder %s512_s11, %s723_s6 }
  0x1b   : > { %p516_p7 = pneg %p515_p6  ;;  %p520_p13 = por %p519_p10, %p518_p4 }
  0x1d   : > { %p522_p1 = por %p521_p12, %p520_p13 }
  0x1f   : > { %p523_p2 = pnand %p522_p1, %p516_p7 }
  0x21   : > { %526 = shalt.err (!%p523_p2)
}
  0x22   : > { %s527_s28 = scalar_lea.vmem %s725_s8, 256  ;;  %s626_s29 = smov [#allocation2]  }
  0x23   : > { %p528_p3 = scmp.ne.s32.totalorder %s725_s8, %s527_s28  ;;  %s532_s30 = sshll.u32 %s626_s29, 4  ;;  %s533_s30 = int_to_ptr.vmem [resolvable:$false] %s532_s30 }
  0x24   : > { %s534_s4 = scalar_lea.vmem %s533_s30, 512  ;;  %p535_p9 = scmp.lt.s32.totalorder %s725_s8, %s533_s30 }
  0x25   : > { %p530_p6 = pnand %p528_p3, %p514_p5  ;;  %p536_p4 = scmp.lt.s32.totalorder %s534_s4, %s527_s28 }
  0x27   : > { %p531_p11 = pneg %p530_p6  ;;  %p537_p10 = por %p536_p4, %p535_p9 }
  0x29   : > { %p538_p12 = pnand %p537_p10, %p531_p11 }
  0x2b   : > { %541 = shalt.err (!%p538_p12)
}
  0x2c   : > { %444 = dma.hbm_to_vmem [thread:$0]  (!%p729_p0), %s723_s6, 256, %s725_s8, %s156_s10  }
  0x2d   : > { %p843_p1 = scmp.lt.s32.totalorder %s624_s17, 3  ;;  %p844_p2 = scmp.ge.s32.totalorder %s624_s17, 1 }
  0x2f   : > { %p175_p5 = pnand %p844_p2, %p843_p1 }
  0x30   : > { %s765_s5 = sand.u32 (!%p175_p5), 1, %s608_s13  }
  0x31   : > { %178 = sbr.rel (%p175_p5) target bundleno = 413 (0x19d), region = 32  ;;  %s413_s7 = sshll.u32 (!%p175_p5), %s765_s5, 4 }
  0x32   : > { %s181_s11 = scalar_lea.sflag (!%p175_p5), [#allocation3], %s765_s5  ;;  %s184_s18 = scalar_lea.vmem (!%p175_p5), [#allocation2], %s413_s7 }
  0x38   : > { %595 = dma.done.wait (%p701_p8), %s181_s11, 256  }
  0x39   : > { %597 = vsyncadd (%p701_p8), %s181_s11, 4294967040  ;;  %v627_v0 = vmov 0.0|0.0   ;;  %vm628_vm0 = vmmov 0   ;;  %v629_v1 = vmov 0.0   ;;  %v211_v2 = vld [vmem:[%s184_s18] sm:$0xff]  ;;  %v212_v3 = vld [vmem:[%s184_s18 + $0x8] sm:$0xff] }
  0x3a   : > { %434 = vmatprep.subr.bf16.mxu0 %v627_v0  ;;  %431 = vmatprep.mubr.msk.f32.mxu0 %vm628_vm0, %v629_v1  ;;  %v505_v4 = vpack.i.bf16 %v212_v3, %v211_v2  ;;  %s630_s6 = smov 126   ;;  %v631_v5 = vmov 0   ;;  %v210_v6 = vld [vmem:[%s835_s2] sm:$0xff]  ;;  %s632_s10 = smov 127   ;;  %vm219_vm1 = vcmask 1039360   ;;  %vm226_vm2 = vcmask 1031168  }
  0x3b   : > { %224 = vrot.lane.b32.xlu1 %v212_v3, %s630_s6  ;;  %511 = vset.pattern.permute.xlu0 %v631_v5  ;;  %v209_v15 = vld [vmem:[%s834_s1] sm:$0xff]  ;;  %vm234_vm3 = vcmask 195584   ;;  %s414_s21 = sshll.u32 %s765_s5, 3  ;;  %s417_s22 = sshll.u32 %s616_s15, 7 }
  0x3c   : > { %510 = vset.pattern.permute.xlu1 %v631_v5  ;;  %506 = vrot.lane.b32.xlu0 %v505_v4, %s632_s10  ;;  %s206_s23 = scalar_lea.vmem [#allocation5], %s414_s21  ;;  %s784_s4 = scalar_lea.hbm %s836_s3, %s417_s22 }
  0x3d   : > { %s324_s28 = sshll.u32 %s206_s23, 4  ;;  %s310_s7 = scalar_lea.sflag [#allocation4], %s765_s5  ;;  %s786_s28 = int_to_ptr.vmem [resolvable:$true] %s324_s28 }
  0x3e   : > { %s542_s11 = scalar_lea.vmem %s786_s28, 128  ;;  %p845_p9 = scmp.ne.s32.totalorder %s840_s25, 0 }
  0x3f   : > { %231 = vperm.xlu1 %510, %v210_v6   ;;  %p543_p8 = scmp.ne.s32.totalorder %s786_s28, %s542_s11  ;;  %s633_s15 = smov [#allocation5]  }
  0x40   : > { %222 = vrot.lane.b32.xlu0 %v211_v2, %s630_s6  ;;  %s546_s18 = sshll.u32 %s633_s15, 4  ;;  %s547_s18 = int_to_ptr.vmem [resolvable:$false] %s546_s18 }
  0x41   : > { %p544_p11 = pnand %p543_p8, %p845_p9  ;;  %s548_s6 = scalar_lea.vmem %s547_s18, 256 }
  0x42   : > { %p549_p7 = scmp.lt.s32.totalorder %s786_s28, %s547_s18  ;;  %p550_p13 = scmp.lt.s32.totalorder %s548_s6, %s542_s11 }
  0x43   : > { %p545_p0 = pneg %p544_p11 }
  0x44   : > { %p551_p3 = por %p550_p13, %p549_p7 }
  0x46   : > { %p552_p6 = pnand %p551_p3, %p545_p0 }
  0xad   : > { %v225_v12 = vpop.permute.xlu1 %224 }
  0xae   : > { %v507_v7 = vpop.permute.xlu0 %506 }
  0xaf   : > { %v509_v8 = vunpack.i.h.bf16 %v507_v7  ;;  %v508_v9 = vunpack.i.l.bf16 %v507_v7 }
  0xb1   : > { %v220_v10 = vsel %vm219_vm1, %v508_v9, %v509_v8 }
  0xb2   : > { %v435_v11 = vpack.c.bf16 %v220_v10, %v211_v2  ;;  %v223_v13 = vpop.permute.xlu0 %222 }
  0xb3   : > { %v227_v14 = vsel %vm226_vm2, %v223_v13, %v225_v12 }
  0xb4   : > { %436 = vmatpush3.bf16.msra.mxu0 %v435_v11 }
  0xb5   : > { %429 = vmatprep.subr.mxu0 %v629_v1 }
  0xb8   : > { %430 = vmatpush3.msra.mxu0 %v227_v14 }
  0xb9   : > { %432 = vmatmul.mubr.msk.f32.vlgmr.msra.gmra.mrb[0].mxu0 %vm234_vm3, %v209_v15 }
  0xbe   : > { %v232_v16 = vpop.permute.xlu1 %231 }
 0x18c   : > { %v304_v17 = vpop.f32.mrb[0].mxu0 }
 0x18d   : > { %v305_v18 = vadd.f32 %v304_v17, %v232_v16  ;;  %v433_v19 = vpop.f32.mrb[1].mxu0 }
 0x18f   : > { %308 = vst [vmem:[%s206_s23] sm:$0xff] %v305_v18 }
 0x190   : > { %555 = shalt.err (!%p552_p6)
}
 0x191   : > { %s556_s5 = scalar_lea.hbm %s784_s4, 128  ;;  %s560_s10 = scalar_lea.hbm %s836_s3, 256 }
 0x192   : > { %p557_p4 = scmp.ne.s32.totalorder %s784_s4, %s556_s5  ;;  %p561_p1 = scmp.lt.u32.totalorder %s784_s4, %s836_s3 }
 0x193   : > { %p562_p2 = scmp.lt.u32.totalorder %s560_s10, %s556_s5  ;;  %p564_p8 = scmp.lt.u32.totalorder %s556_s5, %s784_s4 }
 0x194   : > { %p558_p10 = pnand %p557_p4, %p845_p9 }
 0x195   : > { %p563_p5 = por %p562_p2, %p561_p1 }
 0x196   : > { %p559_p12 = pneg %p558_p10 }
 0x197   : > { %p565_p11 = por %p564_p8, %p563_p5 }
 0x199   : > { %p566_p0 = pnand %p565_p11, %p559_p12 }
 0x19b   : > { %569 = shalt.err (!%p566_p0)
}
 0x19c   : > { %439 = dma.vmem_to_hbm [thread:$0]  (%p845_p9), %s786_s28, 128, %s784_s4, %s310_s7  }
 0x19d PF: > { %s336_s21 = sand.u32 1, %s604_s12   ;;  %p846_p7 = scmp.ne.s32.totalorder %s841_s27, 0 }
 0x19e   : > { %p847_p13 = scmp.ge.s32.totalorder %s624_s17, 2  ;;  %s337_s22 = scalar_lea.sflag [#allocation4], %s336_s21 }
 0x1a0   : > { %p446_p3 = pnand %p847_p13, %p846_p7 }
 0x1a2   : > { %599 = dma.done.wait (!%p446_p3), %s337_s22, 128  }
 0x1a3   : > { %601 = vsyncadd (!%p446_p3), %s337_s22, 4294967168  ;;  %s19_s17 = sadd.s32 1, %s624_s17   ;;  %s848_s12 = smov %s608_s13 }
 0x1a4   : > { %p16_p6 = scmp.ge.s32.totalorder %s19_s17, 4   ;;  %s849_s13 = smov %s612_s14 }
 0x1a5   : > { %s850_s14 = smov %s710_s26  ;;  %s851_s15 = smov %s620_s16 }
 0x1a6   : > { %s852_s16 = smov %s854_s20  ;;  %18 = sbr.rel (!%p16_p6) target bundleno = 6 (0x6), region = 77 }
 0x1ad   :  { %342 = vsyncpa [#allocation3], 1 }
 0x1ae   :  { %344 = vsyncpa [#allocation3 + $0x1], 1 }
 0x1af   :  { %345 = vsyncpa [#allocation4], 1 }
 0x1b0   :  { %347 = vsyncpa [#allocation4 + $0x1], 1 }

</bundles_post_ra>
